<compile_context>
chip_gen: v5e
topology: v5e:2x2
jax: 0.10.0
libtpu: 0.0.40
codegen_flags: <defaults>
</compile_context>

<pallas_src>
import functools

import jax
import jax.numpy as jnp
from jax.experimental import pallas as pl
from jax.experimental.pallas import tpu as pltpu


def _lstm_predictor_kernel(x_ref, gate_ref, reg_ref, out_ref, *, seq_len, hidden_dim):
    T = seq_len
    H = hidden_dim

    x_all = x_ref[...]                         # (B, T)  (input_dim == 1 squeezed away)
    B = x_all.shape[0]

    # ---- unpack packed parameter slabs (one DMA each) ----
    w_hh = gate_ref[0:H, :]                    # (H, 4H)  = W_hh^T
    w_ih = gate_ref[H:H + 1, :]                # (1, 4H)  = W_ih^T  (D == 1)
    bias = gate_ref[H + 1:H + 2, :]            # (1, 4H)  = b_ih + b_hh
    w1 = reg_ref[0:H, :]                       # (H, 8)
    b1 = reg_ref[H:H + 1, :]                   # (1, 8)
    w2_row = reg_ref[H + 1:H + 2, :]           # (1, 8)   = W2^T as a row
    b2 = reg_ref[H + 2:H + 3, 0:1]             # (1, 1)

    # sigmoid(z) = 0.5*(1 + tanh(z/2)): pre-scale i/f/o gate columns by 0.5 ONCE
    # (off the serial chain) so every recurrence step needs a single tanh launch.
    lane = jax.lax.broadcasted_iota(jnp.int32, (1, 4 * H), 1)
    is_g = (lane >= 2 * H) & (lane < 3 * H)
    col_scale = jnp.where(is_g, jnp.float32(1.0), jnp.float32(0.5))   # (1, 4H)

    w_hh_bf = (w_hh * col_scale).astype(jnp.bfloat16)  # bf16 MXU operand, 1 pass/step
    w_ih_s = w_ih * col_scale
    bias_s = bias * col_scale

    # Precompute the (scaled) input contribution of every timestep before the
    # recurrence: D == 1 => plain VPU broadcast multiply, nothing on the MXU.
    xg = [x_all[:, t:t + 1] * w_ih_s + bias_s for t in range(T)]       # T x (B, 4H)

    def activate(pre):
        tg = jnp.tanh(pre)                     # ONE EUP launch over (B, 4H)
        sg = 0.5 * tg + 0.5                    # sigmoid for the i/f/o lanes
        return sg[:, 0:H], sg[:, H:2 * H], tg[:, 2 * H:3 * H], sg[:, 3 * H:4 * H]

    def regress(h):
        # Linear(H,8) -> ReLU -> Linear(8,1); the N=1 matmul is a VPU multiply +
        # lane reduction.  Independent of the recurrence -> hidden under it.
        r1 = jnp.maximum(
            jnp.dot(h, w1, preferred_element_type=jnp.float32) + b1, 0.0)   # (B, 8)
        return jnp.sum(r1 * w2_row, axis=-1, keepdims=True) + b2            # (B, 1)

    lane_t = jax.lax.broadcasted_iota(jnp.int32, (B, T), 1)
    out = jnp.zeros((B, T), jnp.float32)

    # ---- peeled t = 0: h = c = 0 -> no h@W_hh launch, no f*c term ----
    i0, _f0, g0, o0 = activate(xg[0])
    c = i0 * g0
    h = o0 * jnp.tanh(c)
    out = jnp.where(lane_t == 0, regress(h), out)

    # ---- t = 1 .. T-1: fully unrolled; only h@W_hh + gate math is serial ----
    for t in range(1, T):
        pre = xg[t] + jnp.dot(h.astype(jnp.bfloat16), w_hh_bf,
                              preferred_element_type=jnp.float32)        # (B, 4H)
        i_g, f_g, g_g, o_g = activate(pre)
        c = f_g * c + i_g * g_g
        h = o_g * jnp.tanh(c)
        out = jnp.where(lane_t == t, regress(h), out)                    # off-chain

    out_ref[...] = out.astype(out_ref.dtype)   # single dense (B, T) store


def lstm_predictor_forward(x_btd, params):
    """x_btd: (B, T, 1) float32 (batch_first, like the PyTorch module)."""
    B, T, D = x_btd.shape
    assert D == 1, "use_census=False => input_dim == 1"
    H = params["w_hh"].shape[0]                # w_hh stored as (H, 4H) = W_hh^T

    x_bt = x_btd.reshape(B, T)                 # drop trailing singleton dim

    # Pack the 8 tiny parameter arrays into 2 slabs -> 3 input DMAs total.
    gate_slab = jnp.concatenate(
        [params["w_hh"], params["w_ih"], params["b"]], axis=0)          # (H+2, 4H)
    reg_slab = jnp.concatenate(
        [params["w1"], params["b1"], params["w2"].T,
         jnp.broadcast_to(params["b2"], (1, 8))], axis=0)               # (H+3, 8)

    kernel = functools.partial(_lstm_predictor_kernel, seq_len=T, hidden_dim=H)

    out_bt = pl.pallas_call(
        kernel,
        out_shape=jax.ShapeDtypeStruct((B, T), jnp.float32),
        in_specs=[pl.BlockSpec(memory_space=pltpu.MemorySpace.VMEM)] * 3,
        out_specs=pl.BlockSpec(memory_space=pltpu.MemorySpace.VMEM),
    )(x_bt, gate_slab, reg_slab)
    return out_bt[..., None]                   # (B, T, 1)


def _reference_forward(x_btd, params):
    """Pure-JAX f32 reference (mirrors torch.nn.LSTM + regressor)."""
    B, T, D = x_btd.shape
    H = params["w_hh"].shape[0]

    def step(carry, x_t):
        h, c = carry
        gates = x_t @ params["w_ih"] + h @ params["w_hh"] + params["b"][0]
        i = jax.nn.sigmoid(gates[:, 0 * H:1 * H])
        f = jax.nn.sigmoid(gates[:, 1 * H:2 * H])
        g = jnp.tanh(gates[:, 2 * H:3 * H])
        o = jax.nn.sigmoid(gates[:, 3 * H:4 * H])
        c = f * c + i * g
        h = o * jnp.tanh(c)
        r = jnp.maximum(h @ params["w1"] + params["b1"][0], 0.0)
        y = r @ params["w2"] + params["b2"][0]
        return (h, c), y

    init = (jnp.zeros((B, H), jnp.float32), jnp.zeros((B, H), jnp.float32))
    _, ys = jax.lax.scan(step, init, jnp.transpose(x_btd, (1, 0, 2)))
    return jnp.transpose(ys, (1, 0, 2))


def make_params(key, input_dim, hidden_dim):
    """Deterministic synthetic parameters (shapes match nn.LSTM + regressor),
    stored pre-transposed ((in, out) layout) for the kernel."""
    H, D = hidden_dim, input_dim
    ks = jax.random.split(key, 8)
    scale = 1.0 / jnp.sqrt(H)
    return {
        "w_ih": jax.random.uniform(ks[0], (D, 4 * H), jnp.float32, -scale, scale),
        "w_hh": jax.random.uniform(ks[1], (H, 4 * H), jnp.float32, -scale, scale),
        "b": (jax.random.uniform(ks[2], (1, 4 * H), jnp.float32, -scale, scale)
              + jax.random.uniform(ks[3], (1, 4 * H), jnp.float32, -scale, scale)),
        "w1": jax.random.uniform(ks[4], (H, 8), jnp.float32, -scale, scale),
        "b1": jax.random.uniform(ks[5], (1, 8), jnp.float32, -scale, scale),
        "w2": jax.random.uniform(ks[6], (8, 1), jnp.float32, -scale, scale),
        "b2": jax.random.uniform(ks[7], (1, 1), jnp.float32, -scale, scale),
    }


# TODO(synk): use_census=True branch (frozen FeaturesAENetwork encoder) and the
# checkpoint-loading plumbing have no Pallas equivalent here; only the
# use_census=False forward (LSTM + regressor) is implemented.

if __name__ == "__main__":
    B, T, D, H = 2, 8, 1, 32   # use_census=False => input_dim = 1

    key = jax.random.PRNGKey(0)
    k_x, k_p = jax.random.split(key)
    x = jax.random.normal(k_x, (B, T, D), jnp.float32)
    params = make_params(k_p, D, H)

    out = jax.block_until_ready(lstm_predictor_forward(x, params))
    ref = jax.block_until_ready(_reference_forward(x, params))

    assert out.shape == (B, T, 1)
    # bf16 MXU operands on the recurrence matmul => loosened tolerance vs the
    # f32 reference (the sigmoid-via-tanh fusion itself is algebraically exact).
    assert jnp.allclose(out, ref, atol=2e-2, rtol=2e-2), "mismatch vs reference"
    print("KERNEL_OK")
</pallas_src>

<mosaic_0001>
module attributes {stable_mosaic.version = 11 : i64} {
  func.func @_lstm_predictor_kernel(%arg0: memref<2x8xf32, #tpu.memory_space<vmem>>, %arg1: memref<34x128xf32, #tpu.memory_space<vmem>>, %arg2: memref<35x8xf32, #tpu.memory_space<vmem>>, %arg3: memref<2x8xf32, #tpu.memory_space<vmem>>) attributes {dimension_semantics = [], scalar_prefetch = 0 : i64, scratch_operands = 0 : i64, tpu.core_type = #tpu.core_type<tc>} {
    %c0 = arith.constant 0 : index
    %c0_0 = arith.constant 0 : index
    %0 = vector.load %arg0[%c0, %c0_0] : memref<2x8xf32, #tpu.memory_space<vmem>>, vector<2x8xf32>
    %c0_1 = arith.constant 0 : index
    %c0_2 = arith.constant 0 : index
    %1 = vector.load %arg1[%c0_1, %c0_2] : memref<34x128xf32, #tpu.memory_space<vmem>>, vector<32x128xf32>
    %c32 = arith.constant 32 : index
    %c0_3 = arith.constant 0 : index
    %2 = vector.load %arg1[%c32, %c0_3] : memref<34x128xf32, #tpu.memory_space<vmem>>, vector<1x128xf32>
    %c33 = arith.constant 33 : index
    %c0_4 = arith.constant 0 : index
    %3 = vector.load %arg1[%c33, %c0_4] : memref<34x128xf32, #tpu.memory_space<vmem>>, vector<1x128xf32>
    %c0_5 = arith.constant 0 : index
    %c0_6 = arith.constant 0 : index
    %4 = vector.load %arg2[%c0_5, %c0_6] : memref<35x8xf32, #tpu.memory_space<vmem>>, vector<32x8xf32>
    %c32_7 = arith.constant 32 : index
    %c0_8 = arith.constant 0 : index
    %5 = vector.load %arg2[%c32_7, %c0_8] : memref<35x8xf32, #tpu.memory_space<vmem>>, vector<1x8xf32>
    %c33_9 = arith.constant 33 : index
    %c0_10 = arith.constant 0 : index
    %6 = vector.load %arg2[%c33_9, %c0_10] : memref<35x8xf32, #tpu.memory_space<vmem>>, vector<1x8xf32>
    %c34 = arith.constant 34 : index
    %c0_11 = arith.constant 0 : index
    %7 = vector.load %arg2[%c34, %c0_11] : memref<35x8xf32, #tpu.memory_space<vmem>>, vector<1x1xf32>
    %8 = tpu.iota {dimensions = array<i32: 1>} : vector<1x128xi32>
    %c64_i32 = arith.constant 64 : i32
    %9 = vector.broadcast %c64_i32 : i32 to vector<1x128xi32>
    %10 = arith.cmpi sge, %8, %9 : vector<1x128xi32>
    %c96_i32 = arith.constant 96 : i32
    %11 = vector.broadcast %c96_i32 : i32 to vector<1x128xi32>
    %12 = arith.cmpi slt, %8, %11 : vector<1x128xi32>
    %13 = arith.andi %10, %12 : vector<1x128xi1>
    %cst = arith.constant 1.000000e+00 : f32
    %cst_12 = arith.constant 5.000000e-01 : f32
    %14 = vector.broadcast %cst : f32 to vector<1x128xf32>
    %15 = vector.broadcast %cst_12 : f32 to vector<1x128xf32>
    %16 = arith.select %13, %14, %15 : vector<1x128xi1>, vector<1x128xf32>
    %17 = vector.broadcast %16 : vector<1x128xf32> to vector<32x128xf32>
    %18 = arith.mulf %1, %17 : vector<32x128xf32>
    %19 = arith.truncf %18 : vector<32x128xf32> to vector<32x128xbf16>
    %20 = arith.mulf %2, %16 : vector<1x128xf32>
    %21 = arith.mulf %3, %16 : vector<1x128xf32>
    %22 = vector.extract_strided_slice %0 {offsets = [0, 0], sizes = [2, 1], strides = [1, 1]} : vector<2x8xf32> to vector<2x1xf32>
    %23 = vector.broadcast %22 : vector<2x1xf32> to vector<2x128xf32>
    %24 = vector.broadcast %20 : vector<1x128xf32> to vector<2x128xf32>
    %25 = arith.mulf %23, %24 : vector<2x128xf32>
    %26 = vector.broadcast %21 : vector<1x128xf32> to vector<2x128xf32>
    %27 = arith.addf %25, %26 : vector<2x128xf32>
    %28 = vector.extract_strided_slice %0 {offsets = [0, 1], sizes = [2, 1], strides = [1, 1]} : vector<2x8xf32> to vector<2x1xf32>
    %29 = vector.broadcast %28 : vector<2x1xf32> to vector<2x128xf32>
    %30 = vector.broadcast %20 : vector<1x128xf32> to vector<2x128xf32>
    %31 = arith.mulf %29, %30 : vector<2x128xf32>
    %32 = vector.broadcast %21 : vector<1x128xf32> to vector<2x128xf32>
    %33 = arith.addf %31, %32 : vector<2x128xf32>
    %34 = vector.extract_strided_slice %0 {offsets = [0, 2], sizes = [2, 1], strides = [1, 1]} : vector<2x8xf32> to vector<2x1xf32>
    %35 = vector.broadcast %34 : vector<2x1xf32> to vector<2x128xf32>
    %36 = vector.broadcast %20 : vector<1x128xf32> to vector<2x128xf32>
    %37 = arith.mulf %35, %36 : vector<2x128xf32>
    %38 = vector.broadcast %21 : vector<1x128xf32> to vector<2x128xf32>
    %39 = arith.addf %37, %38 : vector<2x128xf32>
    %40 = vector.extract_strided_slice %0 {offsets = [0, 3], sizes = [2, 1], strides = [1, 1]} : vector<2x8xf32> to vector<2x1xf32>
    %41 = vector.broadcast %40 : vector<2x1xf32> to vector<2x128xf32>
    %42 = vector.broadcast %20 : vector<1x128xf32> to vector<2x128xf32>
    %43 = arith.mulf %41, %42 : vector<2x128xf32>
    %44 = vector.broadcast %21 : vector<1x128xf32> to vector<2x128xf32>
    %45 = arith.addf %43, %44 : vector<2x128xf32>
    %46 = vector.extract_strided_slice %0 {offsets = [0, 4], sizes = [2, 1], strides = [1, 1]} : vector<2x8xf32> to vector<2x1xf32>
    %47 = vector.broadcast %46 : vector<2x1xf32> to vector<2x128xf32>
    %48 = vector.broadcast %20 : vector<1x128xf32> to vector<2x128xf32>
    %49 = arith.mulf %47, %48 : vector<2x128xf32>
    %50 = vector.broadcast %21 : vector<1x128xf32> to vector<2x128xf32>
    %51 = arith.addf %49, %50 : vector<2x128xf32>
    %52 = vector.extract_strided_slice %0 {offsets = [0, 5], sizes = [2, 1], strides = [1, 1]} : vector<2x8xf32> to vector<2x1xf32>
    %53 = vector.broadcast %52 : vector<2x1xf32> to vector<2x128xf32>
    %54 = vector.broadcast %20 : vector<1x128xf32> to vector<2x128xf32>
    %55 = arith.mulf %53, %54 : vector<2x128xf32>
    %56 = vector.broadcast %21 : vector<1x128xf32> to vector<2x128xf32>
    %57 = arith.addf %55, %56 : vector<2x128xf32>
    %58 = vector.extract_strided_slice %0 {offsets = [0, 6], sizes = [2, 1], strides = [1, 1]} : vector<2x8xf32> to vector<2x1xf32>
    %59 = vector.broadcast %58 : vector<2x1xf32> to vector<2x128xf32>
    %60 = vector.broadcast %20 : vector<1x128xf32> to vector<2x128xf32>
    %61 = arith.mulf %59, %60 : vector<2x128xf32>
    %62 = vector.broadcast %21 : vector<1x128xf32> to vector<2x128xf32>
    %63 = arith.addf %61, %62 : vector<2x128xf32>
    %64 = vector.extract_strided_slice %0 {offsets = [0, 7], sizes = [2, 1], strides = [1, 1]} : vector<2x8xf32> to vector<2x1xf32>
    %65 = vector.broadcast %64 : vector<2x1xf32> to vector<2x128xf32>
    %66 = vector.broadcast %20 : vector<1x128xf32> to vector<2x128xf32>
    %67 = arith.mulf %65, %66 : vector<2x128xf32>
    %68 = vector.broadcast %21 : vector<1x128xf32> to vector<2x128xf32>
    %69 = arith.addf %67, %68 : vector<2x128xf32>
    %70 = tpu.iota {dimensions = array<i32: 1>} : vector<2x8xi32>
    %cst_13 = arith.constant 0.000000e+00 : f32
    %71 = vector.broadcast %cst_13 : f32 to vector<2x8xf32>
    %72 = math.tanh %27 : vector<2x128xf32>
    %cst_14 = arith.constant 5.000000e-01 : f32
    %73 = vector.broadcast %cst_14 : f32 to vector<2x128xf32>
    %74 = arith.mulf %73, %72 : vector<2x128xf32>
    %cst_15 = arith.constant 5.000000e-01 : f32
    %75 = vector.broadcast %cst_15 : f32 to vector<2x128xf32>
    %76 = arith.addf %74, %75 : vector<2x128xf32>
    %77 = vector.extract_strided_slice %76 {offsets = [0, 0], sizes = [2, 32], strides = [1, 1]} : vector<2x128xf32> to vector<2x32xf32>
    %78 = vector.extract_strided_slice %72 {offsets = [0, 64], sizes = [2, 32], strides = [1, 1]} : vector<2x128xf32> to vector<2x32xf32>
    %79 = vector.extract_strided_slice %76 {offsets = [0, 96], sizes = [2, 32], strides = [1, 1]} : vector<2x128xf32> to vector<2x32xf32>
    %80 = arith.mulf %77, %78 : vector<2x32xf32>
    %81 = math.tanh %80 : vector<2x32xf32>
    %82 = arith.mulf %79, %81 : vector<2x32xf32>
    %c0_i32 = arith.constant 0 : i32
    %83 = vector.broadcast %c0_i32 : i32 to vector<2x8xi32>
    %84 = arith.cmpi eq, %70, %83 : vector<2x8xi32>
    %cst_16 = arith.constant dense<0.000000e+00> : vector<2x8xf32>
    %85 = tpu.matmul %82, %4, %cst_16 {dimension_numbers = #tpu.dot_dimension_numbers<[1], [0], [0], [1], [0, 0, 1, 1], [], []>} : vector<2x32xf32>, vector<32x8xf32>, vector<2x8xf32> -> vector<2x8xf32>
    %86 = vector.broadcast %5 : vector<1x8xf32> to vector<2x8xf32>
    %87 = arith.addf %85, %86 : vector<2x8xf32>
    %cst_17 = arith.constant 0.000000e+00 : f32
    %88 = vector.broadcast %cst_17 : f32 to vector<2x8xf32>
    %89 = arith.maximumf %87, %88 : vector<2x8xf32>
    %90 = vector.broadcast %6 : vector<1x8xf32> to vector<2x8xf32>
    %91 = arith.mulf %89, %90 : vector<2x8xf32>
    %cst_18 = arith.constant dense<0.000000e+00> : vector<2xf32>
    %92 = vector.multi_reduction <add>, %91, %cst_18 [1] : vector<2x8xf32> to vector<2xf32>
    %93 = vector.shape_cast %92 : vector<2xf32> to vector<2x1xf32>
    %94 = vector.broadcast %7 : vector<1x1xf32> to vector<2x1xf32>
    %95 = arith.addf %93, %94 : vector<2x1xf32>
    %96 = vector.shape_cast %95 : vector<2x1xf32> to vector<2x1xf32>
    %97 = vector.broadcast %96 : vector<2x1xf32> to vector<2x8xf32>
    %98 = arith.select %84, %97, %71 : vector<2x8xi1>, vector<2x8xf32>
    %99 = arith.truncf %82 : vector<2x32xf32> to vector<2x32xbf16>
    %cst_19 = arith.constant dense<0.000000e+00> : vector<2x128xf32>
    %100 = tpu.matmul %99, %19, %cst_19 {dimension_numbers = #tpu.dot_dimension_numbers<[1], [0], [0], [1], [0, 0, 1, 1], [], []>} : vector<2x32xbf16>, vector<32x128xbf16>, vector<2x128xf32> -> vector<2x128xf32>
    %101 = arith.addf %33, %100 : vector<2x128xf32>
    %102 = math.tanh %101 : vector<2x128xf32>
    %cst_20 = arith.constant 5.000000e-01 : f32
    %103 = vector.broadcast %cst_20 : f32 to vector<2x128xf32>
    %104 = arith.mulf %103, %102 : vector<2x128xf32>
    %cst_21 = arith.constant 5.000000e-01 : f32
    %105 = vector.broadcast %cst_21 : f32 to vector<2x128xf32>
    %106 = arith.addf %104, %105 : vector<2x128xf32>
    %107 = vector.extract_strided_slice %106 {offsets = [0, 0], sizes = [2, 32], strides = [1, 1]} : vector<2x128xf32> to vector<2x32xf32>
    %108 = vector.extract_strided_slice %106 {offsets = [0, 32], sizes = [2, 32], strides = [1, 1]} : vector<2x128xf32> to vector<2x32xf32>
    %109 = vector.extract_strided_slice %102 {offsets = [0, 64], sizes = [2, 32], strides = [1, 1]} : vector<2x128xf32> to vector<2x32xf32>
    %110 = vector.extract_strided_slice %106 {offsets = [0, 96], sizes = [2, 32], strides = [1, 1]} : vector<2x128xf32> to vector<2x32xf32>
    %111 = arith.mulf %108, %80 : vector<2x32xf32>
    %112 = arith.mulf %107, %109 : vector<2x32xf32>
    %113 = arith.addf %111, %112 : vector<2x32xf32>
    %114 = math.tanh %113 : vector<2x32xf32>
    %115 = arith.mulf %110, %114 : vector<2x32xf32>
    %c1_i32 = arith.constant 1 : i32
    %116 = vector.broadcast %c1_i32 : i32 to vector<2x8xi32>
    %117 = arith.cmpi eq, %70, %116 : vector<2x8xi32>
    %cst_22 = arith.constant dense<0.000000e+00> : vector<2x8xf32>
    %118 = tpu.matmul %115, %4, %cst_22 {dimension_numbers = #tpu.dot_dimension_numbers<[1], [0], [0], [1], [0, 0, 1, 1], [], []>} : vector<2x32xf32>, vector<32x8xf32>, vector<2x8xf32> -> vector<2x8xf32>
    %119 = vector.broadcast %5 : vector<1x8xf32> to vector<2x8xf32>
    %120 = arith.addf %118, %119 : vector<2x8xf32>
    %cst_23 = arith.constant 0.000000e+00 : f32
    %121 = vector.broadcast %cst_23 : f32 to vector<2x8xf32>
    %122 = arith.maximumf %120, %121 : vector<2x8xf32>
    %123 = vector.broadcast %6 : vector<1x8xf32> to vector<2x8xf32>
    %124 = arith.mulf %122, %123 : vector<2x8xf32>
    %cst_24 = arith.constant dense<0.000000e+00> : vector<2xf32>
    %125 = vector.multi_reduction <add>, %124, %cst_24 [1] : vector<2x8xf32> to vector<2xf32>
    %126 = vector.shape_cast %125 : vector<2xf32> to vector<2x1xf32>
    %127 = vector.broadcast %7 : vector<1x1xf32> to vector<2x1xf32>
    %128 = arith.addf %126, %127 : vector<2x1xf32>
    %129 = vector.shape_cast %128 : vector<2x1xf32> to vector<2x1xf32>
    %130 = vector.broadcast %129 : vector<2x1xf32> to vector<2x8xf32>
    %131 = arith.select %117, %130, %98 : vector<2x8xi1>, vector<2x8xf32>
    %132 = arith.truncf %115 : vector<2x32xf32> to vector<2x32xbf16>
    %cst_25 = arith.constant dense<0.000000e+00> : vector<2x128xf32>
    %133 = tpu.matmul %132, %19, %cst_25 {dimension_numbers = #tpu.dot_dimension_numbers<[1], [0], [0], [1], [0, 0, 1, 1], [], []>} : vector<2x32xbf16>, vector<32x128xbf16>, vector<2x128xf32> -> vector<2x128xf32>
    %134 = arith.addf %39, %133 : vector<2x128xf32>
    %135 = math.tanh %134 : vector<2x128xf32>
    %cst_26 = arith.constant 5.000000e-01 : f32
    %136 = vector.broadcast %cst_26 : f32 to vector<2x128xf32>
    %137 = arith.mulf %136, %135 : vector<2x128xf32>
    %cst_27 = arith.constant 5.000000e-01 : f32
    %138 = vector.broadcast %cst_27 : f32 to vector<2x128xf32>
    %139 = arith.addf %137, %138 : vector<2x128xf32>
    %140 = vector.extract_strided_slice %139 {offsets = [0, 0], sizes = [2, 32], strides = [1, 1]} : vector<2x128xf32> to vector<2x32xf32>
    %141 = vector.extract_strided_slice %139 {offsets = [0, 32], sizes = [2, 32], strides = [1, 1]} : vector<2x128xf32> to vector<2x32xf32>
    %142 = vector.extract_strided_slice %135 {offsets = [0, 64], sizes = [2, 32], strides = [1, 1]} : vector<2x128xf32> to vector<2x32xf32>
    %143 = vector.extract_strided_slice %139 {offsets = [0, 96], sizes = [2, 32], strides = [1, 1]} : vector<2x128xf32> to vector<2x32xf32>
    %144 = arith.mulf %141, %113 : vector<2x32xf32>
    %145 = arith.mulf %140, %142 : vector<2x32xf32>
    %146 = arith.addf %144, %145 : vector<2x32xf32>
    %147 = math.tanh %146 : vector<2x32xf32>
    %148 = arith.mulf %143, %147 : vector<2x32xf32>
    %c2_i32 = arith.constant 2 : i32
    %149 = vector.broadcast %c2_i32 : i32 to vector<2x8xi32>
    %150 = arith.cmpi eq, %70, %149 : vector<2x8xi32>
    %cst_28 = arith.constant dense<0.000000e+00> : vector<2x8xf32>
    %151 = tpu.matmul %148, %4, %cst_28 {dimension_numbers = #tpu.dot_dimension_numbers<[1], [0], [0], [1], [0, 0, 1, 1], [], []>} : vector<2x32xf32>, vector<32x8xf32>, vector<2x8xf32> -> vector<2x8xf32>
    %152 = vector.broadcast %5 : vector<1x8xf32> to vector<2x8xf32>
    %153 = arith.addf %151, %152 : vector<2x8xf32>
    %cst_29 = arith.constant 0.000000e+00 : f32
    %154 = vector.broadcast %cst_29 : f32 to vector<2x8xf32>
    %155 = arith.maximumf %153, %154 : vector<2x8xf32>
    %156 = vector.broadcast %6 : vector<1x8xf32> to vector<2x8xf32>
    %157 = arith.mulf %155, %156 : vector<2x8xf32>
    %cst_30 = arith.constant dense<0.000000e+00> : vector<2xf32>
    %158 = vector.multi_reduction <add>, %157, %cst_30 [1] : vector<2x8xf32> to vector<2xf32>
    %159 = vector.shape_cast %158 : vector<2xf32> to vector<2x1xf32>
    %160 = vector.broadcast %7 : vector<1x1xf32> to vector<2x1xf32>
    %161 = arith.addf %159, %160 : vector<2x1xf32>
    %162 = vector.shape_cast %161 : vector<2x1xf32> to vector<2x1xf32>
    %163 = vector.broadcast %162 : vector<2x1xf32> to vector<2x8xf32>
    %164 = arith.select %150, %163, %131 : vector<2x8xi1>, vector<2x8xf32>
    %165 = arith.truncf %148 : vector<2x32xf32> to vector<2x32xbf16>
    %cst_31 = arith.constant dense<0.000000e+00> : vector<2x128xf32>
    %166 = tpu.matmul %165, %19, %cst_31 {dimension_numbers = #tpu.dot_dimension_numbers<[1], [0], [0], [1], [0, 0, 1, 1], [], []>} : vector<2x32xbf16>, vector<32x128xbf16>, vector<2x128xf32> -> vector<2x128xf32>
    %167 = arith.addf %45, %166 : vector<2x128xf32>
    %168 = math.tanh %167 : vector<2x128xf32>
    %cst_32 = arith.constant 5.000000e-01 : f32
    %169 = vector.broadcast %cst_32 : f32 to vector<2x128xf32>
    %170 = arith.mulf %169, %168 : vector<2x128xf32>
    %cst_33 = arith.constant 5.000000e-01 : f32
    %171 = vector.broadcast %cst_33 : f32 to vector<2x128xf32>
    %172 = arith.addf %170, %171 : vector<2x128xf32>
    %173 = vector.extract_strided_slice %172 {offsets = [0, 0], sizes = [2, 32], strides = [1, 1]} : vector<2x128xf32> to vector<2x32xf32>
    %174 = vector.extract_strided_slice %172 {offsets = [0, 32], sizes = [2, 32], strides = [1, 1]} : vector<2x128xf32> to vector<2x32xf32>
    %175 = vector.extract_strided_slice %168 {offsets = [0, 64], sizes = [2, 32], strides = [1, 1]} : vector<2x128xf32> to vector<2x32xf32>
    %176 = vector.extract_strided_slice %172 {offsets = [0, 96], sizes = [2, 32], strides = [1, 1]} : vector<2x128xf32> to vector<2x32xf32>
    %177 = arith.mulf %174, %146 : vector<2x32xf32>
    %178 = arith.mulf %173, %175 : vector<2x32xf32>
    %179 = arith.addf %177, %178 : vector<2x32xf32>
    %180 = math.tanh %179 : vector<2x32xf32>
    %181 = arith.mulf %176, %180 : vector<2x32xf32>
    %c3_i32 = arith.constant 3 : i32
    %182 = vector.broadcast %c3_i32 : i32 to vector<2x8xi32>
    %183 = arith.cmpi eq, %70, %182 : vector<2x8xi32>
    %cst_34 = arith.constant dense<0.000000e+00> : vector<2x8xf32>
    %184 = tpu.matmul %181, %4, %cst_34 {dimension_numbers = #tpu.dot_dimension_numbers<[1], [0], [0], [1], [0, 0, 1, 1], [], []>} : vector<2x32xf32>, vector<32x8xf32>, vector<2x8xf32> -> vector<2x8xf32>
    %185 = vector.broadcast %5 : vector<1x8xf32> to vector<2x8xf32>
    %186 = arith.addf %184, %185 : vector<2x8xf32>
    %cst_35 = arith.constant 0.000000e+00 : f32
    %187 = vector.broadcast %cst_35 : f32 to vector<2x8xf32>
    %188 = arith.maximumf %186, %187 : vector<2x8xf32>
    %189 = vector.broadcast %6 : vector<1x8xf32> to vector<2x8xf32>
    %190 = arith.mulf %188, %189 : vector<2x8xf32>
    %cst_36 = arith.constant dense<0.000000e+00> : vector<2xf32>
    %191 = vector.multi_reduction <add>, %190, %cst_36 [1] : vector<2x8xf32> to vector<2xf32>
    %192 = vector.shape_cast %191 : vector<2xf32> to vector<2x1xf32>
    %193 = vector.broadcast %7 : vector<1x1xf32> to vector<2x1xf32>
    %194 = arith.addf %192, %193 : vector<2x1xf32>
    %195 = vector.shape_cast %194 : vector<2x1xf32> to vector<2x1xf32>
    %196 = vector.broadcast %195 : vector<2x1xf32> to vector<2x8xf32>
    %197 = arith.select %183, %196, %164 : vector<2x8xi1>, vector<2x8xf32>
    %198 = arith.truncf %181 : vector<2x32xf32> to vector<2x32xbf16>
    %cst_37 = arith.constant dense<0.000000e+00> : vector<2x128xf32>
    %199 = tpu.matmul %198, %19, %cst_37 {dimension_numbers = #tpu.dot_dimension_numbers<[1], [0], [0], [1], [0, 0, 1, 1], [], []>} : vector<2x32xbf16>, vector<32x128xbf16>, vector<2x128xf32> -> vector<2x128xf32>
    %200 = arith.addf %51, %199 : vector<2x128xf32>
    %201 = math.tanh %200 : vector<2x128xf32>
    %cst_38 = arith.constant 5.000000e-01 : f32
    %202 = vector.broadcast %cst_38 : f32 to vector<2x128xf32>
    %203 = arith.mulf %202, %201 : vector<2x128xf32>
    %cst_39 = arith.constant 5.000000e-01 : f32
    %204 = vector.broadcast %cst_39 : f32 to vector<2x128xf32>
    %205 = arith.addf %203, %204 : vector<2x128xf32>
    %206 = vector.extract_strided_slice %205 {offsets = [0, 0], sizes = [2, 32], strides = [1, 1]} : vector<2x128xf32> to vector<2x32xf32>
    %207 = vector.extract_strided_slice %205 {offsets = [0, 32], sizes = [2, 32], strides = [1, 1]} : vector<2x128xf32> to vector<2x32xf32>
    %208 = vector.extract_strided_slice %201 {offsets = [0, 64], sizes = [2, 32], strides = [1, 1]} : vector<2x128xf32> to vector<2x32xf32>
    %209 = vector.extract_strided_slice %205 {offsets = [0, 96], sizes = [2, 32], strides = [1, 1]} : vector<2x128xf32> to vector<2x32xf32>
    %210 = arith.mulf %207, %179 : vector<2x32xf32>
    %211 = arith.mulf %206, %208 : vector<2x32xf32>
    %212 = arith.addf %210, %211 : vector<2x32xf32>
    %213 = math.tanh %212 : vector<2x32xf32>
    %214 = arith.mulf %209, %213 : vector<2x32xf32>
    %c4_i32 = arith.constant 4 : i32
    %215 = vector.broadcast %c4_i32 : i32 to vector<2x8xi32>
    %216 = arith.cmpi eq, %70, %215 : vector<2x8xi32>
    %cst_40 = arith.constant dense<0.000000e+00> : vector<2x8xf32>
    %217 = tpu.matmul %214, %4, %cst_40 {dimension_numbers = #tpu.dot_dimension_numbers<[1], [0], [0], [1], [0, 0, 1, 1], [], []>} : vector<2x32xf32>, vector<32x8xf32>, vector<2x8xf32> -> vector<2x8xf32>
    %218 = vector.broadcast %5 : vector<1x8xf32> to vector<2x8xf32>
    %219 = arith.addf %217, %218 : vector<2x8xf32>
    %cst_41 = arith.constant 0.000000e+00 : f32
    %220 = vector.broadcast %cst_41 : f32 to vector<2x8xf32>
    %221 = arith.maximumf %219, %220 : vector<2x8xf32>
    %222 = vector.broadcast %6 : vector<1x8xf32> to vector<2x8xf32>
    %223 = arith.mulf %221, %222 : vector<2x8xf32>
    %cst_42 = arith.constant dense<0.000000e+00> : vector<2xf32>
    %224 = vector.multi_reduction <add>, %223, %cst_42 [1] : vector<2x8xf32> to vector<2xf32>
    %225 = vector.shape_cast %224 : vector<2xf32> to vector<2x1xf32>
    %226 = vector.broadcast %7 : vector<1x1xf32> to vector<2x1xf32>
    %227 = arith.addf %225, %226 : vector<2x1xf32>
    %228 = vector.shape_cast %227 : vector<2x1xf32> to vector<2x1xf32>
    %229 = vector.broadcast %228 : vector<2x1xf32> to vector<2x8xf32>
    %230 = arith.select %216, %229, %197 : vector<2x8xi1>, vector<2x8xf32>
    %231 = arith.truncf %214 : vector<2x32xf32> to vector<2x32xbf16>
    %cst_43 = arith.constant dense<0.000000e+00> : vector<2x128xf32>
    %232 = tpu.matmul %231, %19, %cst_43 {dimension_numbers = #tpu.dot_dimension_numbers<[1], [0], [0], [1], [0, 0, 1, 1], [], []>} : vector<2x32xbf16>, vector<32x128xbf16>, vector<2x128xf32> -> vector<2x128xf32>
    %233 = arith.addf %57, %232 : vector<2x128xf32>
    %234 = math.tanh %233 : vector<2x128xf32>
    %cst_44 = arith.constant 5.000000e-01 : f32
    %235 = vector.broadcast %cst_44 : f32 to vector<2x128xf32>
    %236 = arith.mulf %235, %234 : vector<2x128xf32>
    %cst_45 = arith.constant 5.000000e-01 : f32
    %237 = vector.broadcast %cst_45 : f32 to vector<2x128xf32>
    %238 = arith.addf %236, %237 : vector<2x128xf32>
    %239 = vector.extract_strided_slice %238 {offsets = [0, 0], sizes = [2, 32], strides = [1, 1]} : vector<2x128xf32> to vector<2x32xf32>
    %240 = vector.extract_strided_slice %238 {offsets = [0, 32], sizes = [2, 32], strides = [1, 1]} : vector<2x128xf32> to vector<2x32xf32>
    %241 = vector.extract_strided_slice %234 {offsets = [0, 64], sizes = [2, 32], strides = [1, 1]} : vector<2x128xf32> to vector<2x32xf32>
    %242 = vector.extract_strided_slice %238 {offsets = [0, 96], sizes = [2, 32], strides = [1, 1]} : vector<2x128xf32> to vector<2x32xf32>
    %243 = arith.mulf %240, %212 : vector<2x32xf32>
    %244 = arith.mulf %239, %241 : vector<2x32xf32>
    %245 = arith.addf %243, %244 : vector<2x32xf32>
    %246 = math.tanh %245 : vector<2x32xf32>
    %247 = arith.mulf %242, %246 : vector<2x32xf32>
    %c5_i32 = arith.constant 5 : i32
    %248 = vector.broadcast %c5_i32 : i32 to vector<2x8xi32>
    %249 = arith.cmpi eq, %70, %248 : vector<2x8xi32>
    %cst_46 = arith.constant dense<0.000000e+00> : vector<2x8xf32>
    %250 = tpu.matmul %247, %4, %cst_46 {dimension_numbers = #tpu.dot_dimension_numbers<[1], [0], [0], [1], [0, 0, 1, 1], [], []>} : vector<2x32xf32>, vector<32x8xf32>, vector<2x8xf32> -> vector<2x8xf32>
    %251 = vector.broadcast %5 : vector<1x8xf32> to vector<2x8xf32>
    %252 = arith.addf %250, %251 : vector<2x8xf32>
    %cst_47 = arith.constant 0.000000e+00 : f32
    %253 = vector.broadcast %cst_47 : f32 to vector<2x8xf32>
    %254 = arith.maximumf %252, %253 : vector<2x8xf32>
    %255 = vector.broadcast %6 : vector<1x8xf32> to vector<2x8xf32>
    %256 = arith.mulf %254, %255 : vector<2x8xf32>
    %cst_48 = arith.constant dense<0.000000e+00> : vector<2xf32>
    %257 = vector.multi_reduction <add>, %256, %cst_48 [1] : vector<2x8xf32> to vector<2xf32>
    %258 = vector.shape_cast %257 : vector<2xf32> to vector<2x1xf32>
    %259 = vector.broadcast %7 : vector<1x1xf32> to vector<2x1xf32>
    %260 = arith.addf %258, %259 : vector<2x1xf32>
    %261 = vector.shape_cast %260 : vector<2x1xf32> to vector<2x1xf32>
    %262 = vector.broadcast %261 : vector<2x1xf32> to vector<2x8xf32>
    %263 = arith.select %249, %262, %230 : vector<2x8xi1>, vector<2x8xf32>
    %264 = arith.truncf %247 : vector<2x32xf32> to vector<2x32xbf16>
    %cst_49 = arith.constant dense<0.000000e+00> : vector<2x128xf32>
    %265 = tpu.matmul %264, %19, %cst_49 {dimension_numbers = #tpu.dot_dimension_numbers<[1], [0], [0], [1], [0, 0, 1, 1], [], []>} : vector<2x32xbf16>, vector<32x128xbf16>, vector<2x128xf32> -> vector<2x128xf32>
    %266 = arith.addf %63, %265 : vector<2x128xf32>
    %267 = math.tanh %266 : vector<2x128xf32>
    %cst_50 = arith.constant 5.000000e-01 : f32
    %268 = vector.broadcast %cst_50 : f32 to vector<2x128xf32>
    %269 = arith.mulf %268, %267 : vector<2x128xf32>
    %cst_51 = arith.constant 5.000000e-01 : f32
    %270 = vector.broadcast %cst_51 : f32 to vector<2x128xf32>
    %271 = arith.addf %269, %270 : vector<2x128xf32>
    %272 = vector.extract_strided_slice %271 {offsets = [0, 0], sizes = [2, 32], strides = [1, 1]} : vector<2x128xf32> to vector<2x32xf32>
    %273 = vector.extract_strided_slice %271 {offsets = [0, 32], sizes = [2, 32], strides = [1, 1]} : vector<2x128xf32> to vector<2x32xf32>
    %274 = vector.extract_strided_slice %267 {offsets = [0, 64], sizes = [2, 32], strides = [1, 1]} : vector<2x128xf32> to vector<2x32xf32>
    %275 = vector.extract_strided_slice %271 {offsets = [0, 96], sizes = [2, 32], strides = [1, 1]} : vector<2x128xf32> to vector<2x32xf32>
    %276 = arith.mulf %273, %245 : vector<2x32xf32>
    %277 = arith.mulf %272, %274 : vector<2x32xf32>
    %278 = arith.addf %276, %277 : vector<2x32xf32>
    %279 = math.tanh %278 : vector<2x32xf32>
    %280 = arith.mulf %275, %279 : vector<2x32xf32>
    %c6_i32 = arith.constant 6 : i32
    %281 = vector.broadcast %c6_i32 : i32 to vector<2x8xi32>
    %282 = arith.cmpi eq, %70, %281 : vector<2x8xi32>
    %cst_52 = arith.constant dense<0.000000e+00> : vector<2x8xf32>
    %283 = tpu.matmul %280, %4, %cst_52 {dimension_numbers = #tpu.dot_dimension_numbers<[1], [0], [0], [1], [0, 0, 1, 1], [], []>} : vector<2x32xf32>, vector<32x8xf32>, vector<2x8xf32> -> vector<2x8xf32>
    %284 = vector.broadcast %5 : vector<1x8xf32> to vector<2x8xf32>
    %285 = arith.addf %283, %284 : vector<2x8xf32>
    %cst_53 = arith.constant 0.000000e+00 : f32
    %286 = vector.broadcast %cst_53 : f32 to vector<2x8xf32>
    %287 = arith.maximumf %285, %286 : vector<2x8xf32>
    %288 = vector.broadcast %6 : vector<1x8xf32> to vector<2x8xf32>
    %289 = arith.mulf %287, %288 : vector<2x8xf32>
    %cst_54 = arith.constant dense<0.000000e+00> : vector<2xf32>
    %290 = vector.multi_reduction <add>, %289, %cst_54 [1] : vector<2x8xf32> to vector<2xf32>
    %291 = vector.shape_cast %290 : vector<2xf32> to vector<2x1xf32>
    %292 = vector.broadcast %7 : vector<1x1xf32> to vector<2x1xf32>
    %293 = arith.addf %291, %292 : vector<2x1xf32>
    %294 = vector.shape_cast %293 : vector<2x1xf32> to vector<2x1xf32>
    %295 = vector.broadcast %294 : vector<2x1xf32> to vector<2x8xf32>
    %296 = arith.select %282, %295, %263 : vector<2x8xi1>, vector<2x8xf32>
    %297 = arith.truncf %280 : vector<2x32xf32> to vector<2x32xbf16>
    %cst_55 = arith.constant dense<0.000000e+00> : vector<2x128xf32>
    %298 = tpu.matmul %297, %19, %cst_55 {dimension_numbers = #tpu.dot_dimension_numbers<[1], [0], [0], [1], [0, 0, 1, 1], [], []>} : vector<2x32xbf16>, vector<32x128xbf16>, vector<2x128xf32> -> vector<2x128xf32>
    %299 = arith.addf %69, %298 : vector<2x128xf32>
    %300 = math.tanh %299 : vector<2x128xf32>
    %cst_56 = arith.constant 5.000000e-01 : f32
    %301 = vector.broadcast %cst_56 : f32 to vector<2x128xf32>
    %302 = arith.mulf %301, %300 : vector<2x128xf32>
    %cst_57 = arith.constant 5.000000e-01 : f32
    %303 = vector.broadcast %cst_57 : f32 to vector<2x128xf32>
    %304 = arith.addf %302, %303 : vector<2x128xf32>
    %305 = vector.extract_strided_slice %304 {offsets = [0, 0], sizes = [2, 32], strides = [1, 1]} : vector<2x128xf32> to vector<2x32xf32>
    %306 = vector.extract_strided_slice %304 {offsets = [0, 32], sizes = [2, 32], strides = [1, 1]} : vector<2x128xf32> to vector<2x32xf32>
    %307 = vector.extract_strided_slice %300 {offsets = [0, 64], sizes = [2, 32], strides = [1, 1]} : vector<2x128xf32> to vector<2x32xf32>
    %308 = vector.extract_strided_slice %304 {offsets = [0, 96], sizes = [2, 32], strides = [1, 1]} : vector<2x128xf32> to vector<2x32xf32>
    %309 = arith.mulf %306, %278 : vector<2x32xf32>
    %310 = arith.mulf %305, %307 : vector<2x32xf32>
    %311 = arith.addf %309, %310 : vector<2x32xf32>
    %312 = math.tanh %311 : vector<2x32xf32>
    %313 = arith.mulf %308, %312 : vector<2x32xf32>
    %c7_i32 = arith.constant 7 : i32
    %314 = vector.broadcast %c7_i32 : i32 to vector<2x8xi32>
    %315 = arith.cmpi eq, %70, %314 : vector<2x8xi32>
    %cst_58 = arith.constant dense<0.000000e+00> : vector<2x8xf32>
    %316 = tpu.matmul %313, %4, %cst_58 {dimension_numbers = #tpu.dot_dimension_numbers<[1], [0], [0], [1], [0, 0, 1, 1], [], []>} : vector<2x32xf32>, vector<32x8xf32>, vector<2x8xf32> -> vector<2x8xf32>
    %317 = vector.broadcast %5 : vector<1x8xf32> to vector<2x8xf32>
    %318 = arith.addf %316, %317 : vector<2x8xf32>
    %cst_59 = arith.constant 0.000000e+00 : f32
    %319 = vector.broadcast %cst_59 : f32 to vector<2x8xf32>
    %320 = arith.maximumf %318, %319 : vector<2x8xf32>
    %321 = vector.broadcast %6 : vector<1x8xf32> to vector<2x8xf32>
    %322 = arith.mulf %320, %321 : vector<2x8xf32>
    %cst_60 = arith.constant dense<0.000000e+00> : vector<2xf32>
    %323 = vector.multi_reduction <add>, %322, %cst_60 [1] : vector<2x8xf32> to vector<2xf32>
    %324 = vector.shape_cast %323 : vector<2xf32> to vector<2x1xf32>
    %325 = vector.broadcast %7 : vector<1x1xf32> to vector<2x1xf32>
    %326 = arith.addf %324, %325 : vector<2x1xf32>
    %327 = vector.shape_cast %326 : vector<2x1xf32> to vector<2x1xf32>
    %328 = vector.broadcast %327 : vector<2x1xf32> to vector<2x8xf32>
    %329 = arith.select %315, %328, %296 : vector<2x8xi1>, vector<2x8xf32>
    %c0_61 = arith.constant 0 : index
    %c0_62 = arith.constant 0 : index
    %330 = vector.load %arg3[%c0_61, %c0_62] : memref<2x8xf32, #tpu.memory_space<vmem>>, vector<2x8xf32>
    tpu.vector_store %arg3[%c0_61, %c0_62], %329 {strides = array<i32>} : memref<2x8xf32, #tpu.memory_space<vmem>>, vector<2x8xf32>,
    return
  }
}

</mosaic_0001>

<bundles_post_ra>
// kernel: tpu_custom_call.1
= control target key start
LH: loop header
LB: loop body
LE: loop exit
PB: predicated region body
PF: predicated region fallthrough
CT: control target
= control target key end

     0   :  { %v826_v1 = vmov 0   ;;  %s1110_s0 = inlined_call_operand.vmem [shape: f32[2,8], index: 0, kind: input, shape index: {}]   ;;  %s1111_s1 = inlined_call_operand.vmem [shape: f32[34,128], index: 1, kind: input, shape index: {}]   ;;  %s1112_s2 = inlined_call_operand.vmem [shape: f32[35,8], index: 2, kind: input, shape index: {}]   ;;  %s1113_s3 = inlined_call_operand.hbm [shape: f32[2,8], index: 3, kind: output, shape index: {}]  }
   0x1   :  { %v862_v0 = vld [vmem:[%s1110_s0] sm:$0x3]  ;;  %754 = vset.pattern.permute.xlu0 %v826_v1 }
   0x2   :  { %46 = vperm.xlu0 %754, %v862_v0  }
   0x3   :  { %8 = vsyncpa [#allocation3], 0  ;;  %v30_v2 = vlaneseq  ;;  %v21_v4 = vld [vmem:[%s1111_s1 + $0x20] sm:$0x1]  ;;  %v827_v5 = vmov 0.5   ;;  %s828_s17 = smov 64  }
   0x4   :  { %v22_v7 = vld [vmem:[%s1111_s1 + $0x21] sm:$0x1]  ;;  %s829_s18 = smov 32   ;;  %s830_s19 = smov 96   ;;  %v19_v21 = vld [vmem:[%s1111_s1 + $0x10] sm:$0xff]  ;;  %v20_v22 = vld [vmem:[%s1111_s1 + $0x18] sm:$0xff] }
   0x5   :  { %v866_v3 = vand.u32 127, %v30_v2  ;;  %v17_v23 = vld [vmem:[%s1111_s1] sm:$0xff]  ;;  %v18_v26 = vld [vmem:[%s1111_s1 + $0x8] sm:$0xff]  ;;  %v831_v34 = vmov 1   ;;  %vm114_vm3 = vcmask 261120   ;;  %v832_v55 = vmov 2  }
   0x6   :  { %755 = vset.pattern.permute.xlu2 %v831_v34  ;;  %756 = vset.pattern.permute.xlu1 %v832_v55  ;;  %v929_v2 = vld [vmem:[%s1112_s2 + $0x18] sm:$0xff]  ;;  %v834_v34 = vmov 4   ;;  %vm140_vm4 = vcmask 58368   ;;  %s717_s16 = sshll.u32 %s1113_s3, 4  ;;  %s718_s16 = int_to_ptr.hbm [resolvable:$true] %s717_s16 }
   0x7   :  { %vm32_vm0 = vcmp.ge.s32.totalorder %v866_v3, 64  ;;  %vm33_vm1 = vcmp.lt.s32.totalorder %v866_v3, 96  ;;  %54 = vperm.xlu2 %755, %v862_v0   ;;  %215 = vmatpush.msra.mxu2 %v929_v2  ;;  %vm109_vm5 = vcmp.eq.s32.totalorder %v866_v3, 0  ;;  %vm197_vm6 = vcmp.eq.s32.totalorder %v866_v3, 1 }
   0x8   :  { %vm34_vm2 = vmand %vm32_vm0, %vm33_vm1  ;;  %129 = vmatpush.msra.mxu0 %v929_v2  ;;  %vm276_vm7 = vcmp.eq.s32.totalorder %v866_v3, 2  ;;  %vm355_vm8 = vcmp.eq.s32.totalorder %v866_v3, 3  ;;  %vm434_vm9 = vcmp.eq.s32.totalorder %v866_v3, 4  ;;  %vm513_vm10 = vcmp.eq.s32.totalorder %v866_v3, 5 }
   0x9   :  { %v35_v6 = vsel %vm34_vm2, 1.0, %v827_v5  ;;  %v941_v5 = vld [vmem:[%s1112_s2 + $0x8] sm:$0xff]  ;;  %vm592_vm11 = vcmp.eq.s32.totalorder %v866_v3, 6  ;;  %vm671_vm12 = vcmp.eq.s32.totalorder %v866_v3, 7 }
   0xa   :  { %v42_v8 = vmul.f32 %v35_v6, %v21_v4  ;;  %v43_v9 = vmul.f32 %v35_v6, %v22_v7  ;;  %v38_v24 = vmul.f32 %v35_v6, %v19_v21  ;;  %v39_v25 = vmul.f32 %v35_v6, %v20_v22  ;;  %v936_v4 = vld [vmem:[%s1112_s2 + $0x10] sm:$0xff]  ;;  %758 = vset.pattern.permute.xlu0 %v834_v34 }
   0xb   :  { %v36_v27 = vmul.f32 %v35_v6, %v17_v23  ;;  %v37_v28 = vmul.f32 %v35_v6, %v18_v26  ;;  %216 = vmatpush.msra.mxu2 %v936_v4  ;;  %130 = vmatpush.msra.mxu0 %v936_v4  ;;  %v950_v6 = vld [vmem:[%s1112_s2] sm:$0xff]  ;;  %v833_v21 = vmov 3   ;;  %v836_v34 = vmov 6  }
   0xc   :  { %v876_v10 = vperm.slane %v42_v8, 0  ;;  %v878_v11 = vperm.slane %v43_v9, 0  ;;  %v896_v29 = vpack.c.bf16 %v39_v25, %v38_v24 }
   0xd   :  { %v899_v30 = vpack.c.bf16 %v37_v28, %v36_v27  ;;  %217 = vmatpush.msra.mxu2 %v941_v5  ;;  %131 = vmatpush.msra.mxu0 %v941_v5 }
   0xe   :  { %165 = vmatpush.bf16.msra.mxu1 %v896_v29  ;;  %248 = vmatpush.bf16.msra.mxu3 %v896_v29 }
   0xf   :  { %764 = vset.pattern.permute.xlu2 %v826_v1  ;;  %218 = vmatpush.msra.mxu2 %v950_v6 }
  0x10   :  { %132 = vmatpush.msra.mxu0 %v950_v6 }
  0x11   :  { %327 = vmatpush.bf16.msrb.mxu2 %v896_v29 }
  0x12   :  { %166 = vmatpush.bf16.msra.mxu1 %v899_v30  ;;  %249 = vmatpush.bf16.msra.mxu3 %v899_v30 }
  0x13   :  { %294 = vmatpush.msrb.mxu0 %v929_v2 }
  0x15   :  { %295 = vmatpush.msrb.mxu0 %v936_v4  ;;  %328 = vmatpush.bf16.msrb.mxu2 %v899_v30 }
  0x16   :  { %406 = vmatpush.bf16.msrb.mxu1 %v896_v29  ;;  %452 = vmatpush.msrb.mxu3 %v929_v2 }
  0x17   :  { %296 = vmatpush.msrb.mxu0 %v941_v5 }
  0x18   :  { %453 = vmatpush.msrb.mxu3 %v936_v4 }
  0x19   :  { %297 = vmatpush.msrb.mxu0 %v950_v6 }
  0x1a   :  { %407 = vmatpush.bf16.msrb.mxu1 %v899_v30  ;;  %454 = vmatpush.msrb.mxu3 %v941_v5 }
  0x1c   :  { %455 = vmatpush.msrb.mxu3 %v950_v6 }
  0x61   :  { %v55_v36 = vpop.permute.xlu2 %54 }
  0x62   :  { %v57_v37 = vmul.f32 %v55_v36, %v876_v10 }
  0x64   :  { %v58_v38 = vadd.f32 %v57_v37, %v878_v11 }
  0x74   :  { %v47_v12 = vpop.permute.xlu0 %46 }
  0x75   :  { %v50_v13 = vmul.f32 %v876_v10, %v47_v12 }
  0x77   :  { %v52_v14 = vadd.f32 %v878_v11, %v50_v13 }
  0x79   :  { %768 = vtanh.f32 %v52_v14 }
  0x7f   :  { %v769_v15 = vpop.eup %768 }
  0x80   :  { %99 = vrot.lane.b32.xlu0 %v769_v15, %s828_s17  ;;  %v96_v16 = vmul.f32 0.5, %v769_v15 }
  0x82   :  { %v97_v17 = vadd.f32 0.5, %v96_v16 }
  0xf2   :  { %v100_v18 = vpop.permute.xlu0 %99 }
  0xf3   :  { %v102_v19 = vmul.f32 %v100_v18, %v97_v17 }
  0xf5   :  { %770 = vtanh.f32 %v102_v19  ;;  %177 = vrot.lane.b32.xlu0 %v102_v19, %s829_s18 }
  0xfb   :  { %v771_v20 = vpop.eup %770 }
  0xfc   :  { %105 = vrot.lane.b32.xlu1 %v771_v20, %s830_s19 }
 0x167   :  { %v178_v47 = vpop.permute.xlu0 %177 }
 0x16e   :  { %v106_v31 = vpop.permute.xlu1 %105 }
 0x16f   :  { %v906_v32 = vmul.f32 %v106_v31, %v97_v17 }
 0x171   :  { %v152_v33 = vpack.c.bf16 %v906_v32, %v906_v32 }
 0x173   :  { %154 = vrot.lane.b32.xlu1 %v152_v33, %s829_s18 }
 0x1e5   :  { %v155_v35 = vpop.permute.xlu1 %154 }
 0x1e6   :  { %727 = vmatmul.msk.bf16.vlgmr.msra.gmra.mxu1 %vm114_vm3, %v155_v35 }
 0x1e7   :  { %610 = vmatpush.msra.mxu1 %v929_v2 }
 0x1e9   :  { %611 = vmatpush.msra.mxu1 %v936_v4 }
 0x1eb   :  { %612 = vmatpush.msra.mxu1 %v941_v5 }
 0x1ed   :  { %613 = vmatpush.msra.mxu1 %v950_v6 }
 0x263   :  { %v168_v39 = vpop.f32.mrf.mxu1 }
 0x264   :  { %v172_v40 = vadd.f32 %v168_v39, %v58_v38 }
 0x266   :  { %772 = vtanh.f32 %v172_v40 }
 0x26b   :  { %v170_v41 = vpop.f32.mrf.mxu1 }
 0x26c   :  { %v773_v42 = vpop.eup %772 }
 0x26d   :  { %182 = vrot.lane.b32.xlu2 %v773_v42, %s828_s17  ;;  %v174_v43 = vmul.f32 0.5, %v773_v42 }
 0x26f   :  { %v175_v44 = vadd.f32 0.5, %v174_v43 }
 0x271   :  { %v180_v48 = vmul.f32 %v178_v47, %v175_v44 }
 0x2c7   :  { %v183_v45 = vpop.permute.xlu2 %182 }
 0x2c8   :  { %v185_v46 = vmul.f32 %v183_v45, %v175_v44 }
 0x2ca   :  { %187 = vrot.lane.b32.xlu1 %v185_v46, %s829_s18 }
 0x2d2   :  { %60 = vperm.xlu1 %756, %v862_v0  }
 0x2da   :  { %757 = vset.pattern.permute.xlu1 %v833_v21 }
 0x33c   :  { %v188_v49 = vpop.permute.xlu1 %187 }
 0x33d   :  { %v190_v50 = vadd.f32 %v188_v49, %v180_v48 }
 0x33f   :  { %774 = vtanh.f32 %v190_v50 }
 0x344   :  { %v61_v57 = vpop.permute.xlu1 %60 }
 0x345   :  { %v775_v51 = vpop.eup %774  ;;  %v63_v58 = vmul.f32 %v61_v57, %v876_v10 }
 0x346   :  { %193 = vrot.lane.b32.xlu2 %v775_v51, %s828_s17 }
 0x347   :  { %v64_v59 = vadd.f32 %v63_v58, %v878_v11 }
 0x3a0   :  { %v194_v52 = vpop.permute.xlu2 %193 }
 0x3a1   :  { %v196_v53 = vmul.f32 %v194_v52, %v175_v44 }
 0x3a3   :  { %v235_v54 = vpack.c.bf16 %v196_v53, %v196_v53 }
 0x3a5   :  { %237 = vrot.lane.b32.xlu0 %v235_v54, %s829_s18 }
 0x417   :  { %v238_v56 = vpop.permute.xlu0 %237 }
 0x418   :  { %729 = vmatmul.msk.bf16.vlgmr.msra.gmra.mxu3 %vm114_vm3, %v238_v56 }
 0x419   :  { %564 = vmatpush.bf16.msra.mxu3 %v896_v29 }
 0x41d   :  { %565 = vmatpush.bf16.msra.mxu3 %v899_v30 }
 0x49b   :  { %v251_v60 = vpop.f32.mrf.mxu3 }
 0x49c   :  { %v255_v61 = vadd.f32 %v251_v60, %v64_v59 }
 0x49e   :  { %776 = vtanh.f32 %v255_v61 }
 0x4a3   :  { %v253_v62 = vpop.f32.mrf.mxu3 }
 0x4a4   :  { %v777_v63 = vpop.eup %776 }
 0x4a5   :  { %261 = vrot.lane.b32.xlu2 %v777_v63, %s828_s17  ;;  %v257_v7 = vmul.f32 0.5, %v777_v63 }
 0x4a7   :  { %v258_v8 = vadd.f32 0.5, %v257_v7 }
 0x4a9   :  { %v259_v14 = vmul.f32 %v258_v8, %v190_v50 }
 0x4ad   :  { %199 = vrot.lane.b32.xlu2 %v196_v53, %s829_s18 }
 0x4ff   :  { %v262_v9 = vpop.permute.xlu2 %261 }
 0x500   :  { %v264_v12 = vmul.f32 %v262_v9, %v258_v8 }
 0x502   :  { %266 = vrot.lane.b32.xlu0 %v264_v12, %s829_s18  ;;  %v835_v12 = vmov 5  }
 0x507   :  { %v200_v13 = vpop.permute.xlu2 %199 }
 0x508   :  { %728 = vmatmul.msk.f32.vlgmr.msra.gmra.mxu2 %vm114_vm3, %v200_v13 }
 0x509   :  { %531 = vmatpush.msra.mxu2 %v929_v2 }
 0x50b   :  { %532 = vmatpush.msra.mxu2 %v936_v4 }
 0x50d   :  { %533 = vmatpush.msra.mxu2 %v941_v5 }
 0x50f   :  { %534 = vmatpush.msra.mxu2 %v950_v6 }
 0x574   :  { %v267_v15 = vpop.permute.xlu0 %266 }
 0x575   :  { %v269_v16 = vadd.f32 %v267_v15, %v259_v14 }
 0x577   :  { %778 = vtanh.f32 %v269_v16 }
 0x57d   :  { %v779_v17 = vpop.eup %778 }
 0x57e   :  { %272 = vrot.lane.b32.xlu1 %v779_v17, %s828_s17 }
 0x586   :  { %66 = vperm.xlu1 %757, %v862_v0  }
 0x58b   :  { %v982_v24 = vpop.f32.mrf.mxu2 }
 0x58e   :  { %760 = vset.pattern.permute.xlu1 %v836_v34  ;;  %v767_v34 = vld [vmem:[%s1112_s2 + $0x22] ss:$0 sm:$0xff] }
 0x5f0   :  { %v273_v18 = vpop.permute.xlu1 %272 }
 0x5f1   :  { %v275_v19 = vmul.f32 %v273_v18, %v258_v8 }
 0x5f3   :  { %v314_v20 = vpack.c.bf16 %v275_v19, %v275_v19 }
 0x5f5   :  { %316 = vrot.lane.b32.xlu0 %v314_v20, %s829_s18 }
 0x5f8   :  { %v67_v23 = vpop.permute.xlu1 %66 }
 0x5f9   :  { %v69_v25 = vmul.f32 %v67_v23, %v876_v10 }
 0x5fb   :  { %v70_v26 = vadd.f32 %v69_v25, %v878_v11 }
 0x667   :  { %v317_v22 = vpop.permute.xlu0 %316 }
 0x668   :  { %731 = vmatmul.msk.bf16.vlgmr.msrb.gmra.mxu2 %vm114_vm3, %v317_v22 }
 0x669   :  { %643 = vmatpush.bf16.msrb.mxu2 %v896_v29 }
 0x66d   :  { %644 = vmatpush.bf16.msrb.mxu2 %v899_v30 }
 0x6eb   :  { %v330_v27 = vpop.f32.mrf.mxu2 }
 0x6ec   :  { %v334_v28 = vadd.f32 %v330_v27, %v70_v26 }
 0x6ee   :  { %780 = vtanh.f32 %v334_v28 }
 0x6f3   :  { %v332_v31 = vpop.f32.mrf.mxu2 }
 0x6f4   :  { %v781_v33 = vpop.eup %780 }
 0x6f5   :  { %340 = vrot.lane.b32.xlu2 %v781_v33, %s828_s17  ;;  %v336_v35 = vmul.f32 0.5, %v781_v33 }
 0x6f7   :  { %v337_v36 = vadd.f32 0.5, %v336_v35 }
 0x6f9   :  { %v338_v39 = vmul.f32 %v337_v36, %v269_v16 }
 0x74f   :  { %v341_v37 = vpop.permute.xlu2 %340 }
 0x750   :  { %v343_v38 = vmul.f32 %v341_v37, %v337_v36 }
 0x752   :  { %345 = vrot.lane.b32.xlu0 %v343_v38, %s829_s18 }
 0x75a   :  { %72 = vperm.xlu0 %758, %v862_v0  }
 0x762   :  { %278 = vrot.lane.b32.xlu0 %v275_v19, %s829_s18 }
 0x763   :  { %759 = vset.pattern.permute.xlu0 %v835_v12 }
 0x76a   :  { %78 = vperm.xlu0 %759, %v862_v0  }
 0x772   :  { %762 = vset.pattern.permute.xlu0 %v826_v1 }
 0x7c4   :  { %v346_v40 = vpop.permute.xlu0 %345 }
 0x7c5   :  { %v348_v41 = vadd.f32 %v346_v40, %v338_v39 }
 0x7c7   :  { %782 = vtanh.f32 %v348_v41 }
 0x7cc   :  { %v73_v47 = vpop.permute.xlu0 %72 }
 0x7cd   :  { %v783_v42 = vpop.eup %782  ;;  %v75_v48 = vmul.f32 %v73_v47, %v876_v10 }
 0x7ce   :  { %351 = vrot.lane.b32.xlu1 %v783_v42, %s828_s17 }
 0x7cf   :  { %v76_v49 = vadd.f32 %v75_v48, %v878_v11 }
 0x7d4   :  { %v279_v63 = vpop.permute.xlu0 %278 }
 0x840   :  { %v352_v43 = vpop.permute.xlu1 %351 }
 0x841   :  { %v354_v44 = vmul.f32 %v352_v43, %v337_v36 }
 0x843   :  { %v393_v45 = vpack.c.bf16 %v354_v44, %v354_v44 }
 0x845   :  { %395 = vrot.lane.b32.xlu2 %v393_v45, %s829_s18 }
 0x89f   :  { %v396_v46 = vpop.permute.xlu2 %395 }
 0x8a0   :  { %733 = vmatmul.msk.bf16.vlgmr.msrb.gmra.mxu1 %vm114_vm3, %v396_v46 }
 0x91d   :  { %v409_v50 = vpop.f32.mrf.mxu1 }
 0x91e   :  { %v413_v51 = vadd.f32 %v409_v50, %v76_v49 }
 0x920   :  { %784 = vtanh.f32 %v413_v51 }
 0x925   :  { %v411_v52 = vpop.f32.mrf.mxu1 }
 0x926   :  { %v785_v53 = vpop.eup %784 }
 0x927   :  { %419 = vrot.lane.b32.xlu1 %v785_v53, %s828_s17  ;;  %v415_v54 = vmul.f32 0.5, %v785_v53 }
 0x929   :  { %v416_v55 = vadd.f32 0.5, %v415_v54 }
 0x92b   :  { %v417_v58 = vmul.f32 %v416_v55, %v348_v41 }
 0x999   :  { %v420_v56 = vpop.permute.xlu1 %419 }
 0x99a   :  { %v422_v57 = vmul.f32 %v420_v56, %v416_v55  ;;  %v837_v56 = vmov 7  }
 0x99c   :  { %424 = vrot.lane.b32.xlu2 %v422_v57, %s829_s18 }
 0x9a4   :  { %112 = vrot.lane.b32.xlu2 %v906_v32, %s829_s18 }
 0x9f6   :  { %v425_v59 = vpop.permute.xlu2 %424 }
 0x9f7   :  { %v427_v60 = vadd.f32 %v425_v59, %v417_v58 }
 0x9f9   :  { %786 = vtanh.f32 %v427_v60 }
 0x9fe   :  { %v113_v61 = vpop.permute.xlu2 %112 }
 0x9ff   :  { %v787_v62 = vpop.eup %786  ;;  %726 = vmatmul.msk.f32.vlgmr.msra.gmra.mxu0 %vm114_vm3, %v113_v61 }
 0xa00   :  { %430 = vrot.lane.b32.xlu1 %v787_v62, %s828_s17  ;;  %373 = vmatpush.msra.mxu0 %v929_v2 }
 0xa02   :  { %374 = vmatpush.msra.mxu0 %v936_v4 }
 0xa04   :  { %375 = vmatpush.msra.mxu0 %v941_v5 }
 0xa06   :  { %376 = vmatpush.msra.mxu0 %v950_v6 }
 0xa07   :  { %730 = vmatmul.msk.f32.vlgmr.msrb.gmra.mxu0 %vm114_vm3, %v279_v63 }
 0xa08   :  { %357 = vrot.lane.b32.xlu1 %v354_v44, %s829_s18  ;;  %485 = vmatpush.bf16.msrb.mxu0 %v896_v29 }
 0xa0c   :  { %486 = vmatpush.bf16.msrb.mxu0 %v899_v30 }
 0xa72   :  { %v431_v32 = vpop.permute.xlu1 %430 }
 0xa73   :  { %v433_v7 = vmul.f32 %v431_v32, %v416_v55 }
 0xa75   :  { %v472_v8 = vpack.c.bf16 %v433_v7, %v433_v7 }
 0xa77   :  { %474 = vrot.lane.b32.xlu2 %v472_v8, %s829_s18 }
 0xa7a   :  { %v358_v9 = vpop.permute.xlu1 %357 }
 0xa7b   :  { %732 = vmatmul.msk.f32.vlgmr.msra.gmra.mxu0 %vm114_vm3, %v358_v9 }
 0xa7c   :  { %689 = vmatpush.msra.mxu0 %v929_v2  ;;  %v1018_v30 = vpop.f32.mrf.mxu0  ;;  %v79_v2 = vpop.permute.xlu0 %78 }
 0xa7e   :  { %690 = vmatpush.msra.mxu0 %v936_v4  ;;  %v81_v4 = vmul.f32 %v79_v2, %v876_v10 }
 0xa80   :  { %691 = vmatpush.msra.mxu0 %v941_v5  ;;  %v82_v5 = vadd.f32 %v81_v4, %v878_v11 }
 0xa82   :  { %692 = vmatpush.msra.mxu0 %v950_v6 }
 0xa84   :  { %v1020_v13 = vpop.f32.mrf.mxu0 }
 0xad1   :  { %v475_v29 = vpop.permute.xlu2 %474 }
 0xad2   :  { %735 = vmatmul.msk.bf16.vlgmr.msrb.gmra.mxu0 %vm114_vm3, %v475_v29 }
 0xaf8   :  { %v1022_v14 = vpop.f32.mrf.mxu0 }
 0xb4f   :  { %v488_v6 = vpop.f32.mrf.mxu0 }
 0xb50   :  { %v492_v15 = vadd.f32 %v488_v6, %v82_v5 }
 0xb52   :  { %788 = vtanh.f32 %v492_v15 }
 0xb57   :  { %v490_v16 = vpop.f32.mrf.mxu0 }
 0xb58   :  { %v789_v17 = vpop.eup %788 }
 0xb59   :  { %498 = vrot.lane.b32.xlu1 %v789_v17, %s828_s17  ;;  %v494_v18 = vmul.f32 0.5, %v789_v17 }
 0xb5b   :  { %v495_v19 = vadd.f32 0.5, %v494_v18 }
 0xb5d   :  { %v496_v22 = vmul.f32 %v495_v19, %v427_v60 }
 0xbcb   :  { %v499_v20 = vpop.permute.xlu1 %498 }
 0xbcc   :  { %v501_v21 = vmul.f32 %v499_v20, %v495_v19 }
 0xbce   :  { %503 = vrot.lane.b32.xlu2 %v501_v21, %s829_s18 }
 0xbd6   :  { %436 = vrot.lane.b32.xlu2 %v433_v7, %s829_s18 }
 0xc28   :  { %v504_v23 = vpop.permute.xlu2 %503 }
 0xc29   :  { %v506_v25 = vadd.f32 %v504_v23, %v496_v22 }
 0xc2b   :  { %790 = vtanh.f32 %v506_v25 }
 0xc30   :  { %v437_v26 = vpop.permute.xlu2 %436 }
 0xc31   :  { %v791_v27 = vpop.eup %790  ;;  %734 = vmatmul.msk.f32.vlgmr.msrb.gmra.mxu3 %vm114_vm3, %v437_v26 }
 0xc32   :  { %509 = vrot.lane.b32.xlu1 %v791_v27, %s828_s17 }
 0xc3a   :  { %84 = vperm.xlu1 %760, %v862_v0  }
 0xc42   :  { %761 = vset.pattern.permute.xlu1 %v837_v56 }
 0xca4   :  { %v510_v28 = vpop.permute.xlu1 %509 }
 0xca5   :  { %v512_v31 = vmul.f32 %v510_v28, %v495_v19 }
 0xca7   :  { %v551_v33 = vpack.c.bf16 %v512_v31, %v512_v31 }
 0xca9   :  { %553 = vrot.lane.b32.xlu0 %v551_v33, %s829_s18 }
 0xcac   :  { %v85_v36 = vpop.permute.xlu1 %84 }
 0xcad   :  { %v87_v38 = vmul.f32 %v85_v36, %v876_v10 }
 0xcaf   :  { %v88_v39 = vadd.f32 %v87_v38, %v878_v11 }
 0xcb4   :  { %v1034_v37 = vpop.f32.mrf.mxu3 }
 0xd1b   :  { %v554_v35 = vpop.permute.xlu0 %553 }
 0xd1c   :  { %737 = vmatmul.msk.bf16.vlgmr.msra.gmra.mxu3 %vm114_vm3, %v554_v35 }
 0xd9f   :  { %v567_v40 = vpop.f32.mrf.mxu3 }
 0xda0   :  { %v571_v41 = vadd.f32 %v567_v40, %v88_v39 }
 0xda2   :  { %792 = vtanh.f32 %v571_v41 }
 0xda7   :  { %v569_v42 = vpop.f32.mrf.mxu3 }
 0xda8   :  { %v793_v43 = vpop.eup %792 }
 0xda9   :  { %577 = vrot.lane.b32.xlu2 %v793_v43, %s828_s17  ;;  %v573_v44 = vmul.f32 0.5, %v793_v43 }
 0xdab   :  { %v574_v45 = vadd.f32 0.5, %v573_v44 }
 0xdad   :  { %v575_v49 = vmul.f32 %v574_v45, %v506_v25 }
 0xdb1   :  { %515 = vrot.lane.b32.xlu2 %v512_v31, %s829_s18 }
 0xe03   :  { %v578_v46 = vpop.permute.xlu2 %577 }
 0xe04   :  { %v580_v47 = vmul.f32 %v578_v46, %v574_v45 }
 0xe06   :  { %582 = vrot.lane.b32.xlu0 %v580_v47, %s829_s18 }
 0xe0b   :  { %v516_v48 = vpop.permute.xlu2 %515 }
 0xe0c   :  { %736 = vmatmul.msk.f32.vlgmr.msra.gmra.mxu2 %vm114_vm3, %v516_v48 }
 0xe78   :  { %v583_v50 = vpop.permute.xlu0 %582 }
 0xe79   :  { %v585_v51 = vadd.f32 %v583_v50, %v575_v49 }
 0xe7b   :  { %794 = vtanh.f32 %v585_v51 }
 0xe81   :  { %v795_v52 = vpop.eup %794 }
 0xe82   :  { %588 = vrot.lane.b32.xlu1 %v795_v52, %s828_s17 }
 0xe8a   :  { %90 = vperm.xlu1 %761, %v862_v0   ;;  %v1054_v0 = vld [vmem:[%s1112_s2 + $0x20] ss:$0 sm:$0xff] }
 0xe8b   :  { %v135_v22 = vadd.f32 %v1054_v0, %v1018_v30  ;;  %v221_v39 = vadd.f32 %v1054_v0, %v982_v24  ;;  %v379_v41 = vadd.f32 %v1054_v0, %v1022_v14  ;;  %v458_v47 = vadd.f32 %v1054_v0, %v1034_v37 }
 0xe8d   :  { %v137_v23 = vmax.f32 %v135_v22, 0.0  ;;  %v223_v40 = vmax.f32 %v221_v39, 0.0  ;;  %v381_v44 = vmax.f32 %v379_v41, 0.0  ;;  %v460_v24 = vmax.f32 %v458_v47, 0.0 }
 0xe8f   :  { %v536_v59 = vpop.f32.mrf.mxu2 }
 0xe90   :  { %v537_v25 = vadd.f32 %v1054_v0, %v536_v59 }
 0xe92   :  { %763 = vset.pattern.permute.xlu1 %v826_v1  ;;  %v300_v1 = vadd.f32 %v1054_v0, %v1020_v13  ;;  %v539_v27 = vmax.f32 %v537_v25, 0.0 }
 0xef4   :  { %v589_v53 = vpop.permute.xlu1 %588 }
 0xef5   :  { %v591_v54 = vmul.f32 %v589_v53, %v574_v45 }
 0xef7   :  { %v630_v55 = vpack.c.bf16 %v591_v54, %v591_v54 }
 0xef9   :  { %632 = vrot.lane.b32.xlu0 %v630_v55, %s829_s18 }
 0xefc   :  { %v91_v58 = vpop.permute.xlu1 %90 }
 0xefd   :  { %v93_v60 = vmul.f32 %v91_v58, %v876_v10  ;;  %v302_v10 = vmax.f32 %v300_v1, 0.0 }
 0xeff   :  { %v94_v61 = vadd.f32 %v93_v60, %v878_v11  ;;  %v1061_v11 = vld [vmem:[%s1112_s2 + $0x21] ss:$0 sm:$0xff]  ;;  %s838_s2 = smov [#allocation2]  }
 0xf00   :  { %v303_v8 = vmul.f32 %v1061_v11, %v302_v10  ;;  %v139_v26 = vmul.f32 %v1061_v11, %v137_v23  ;;  %v540_v31 = vmul.f32 %v1061_v11, %v539_v27  ;;  %v224_v42 = vmul.f32 %v1061_v11, %v223_v40  ;;  %s715_s14 = sshll.u32 %s838_s2, 4  ;;  %s716_s14 = int_to_ptr.vmem [resolvable:$true] %s715_s14 }
 0xf01   :  { %v382_v48 = vmul.f32 %v1061_v11, %v381_v44  ;;  %v461_v14 = vmul.f32 %v1061_v11, %v460_v24 }
 0xf02   :  { %v304_v9 = vsel %vm140_vm4, %v303_v8, 0.0  ;;  %v141_v28 = vsel %vm140_vm4, %v139_v26, 0.0  ;;  %v541_v33 = vsel %vm140_vm4, %v540_v31, 0.0  ;;  %v225_v46 = vsel %vm140_vm4, %v224_v42, 0.0 }
 0xf03   :  { %v462_v52 = vsel %vm140_vm4, %v461_v14, 0.0 }
 0xf6b   :  { %v633_v57 = vpop.permute.xlu0 %632 }
 0xf6c   :  { %739 = vmatmul.msk.bf16.vlgmr.msrb.gmra.mxu2 %vm114_vm3, %v633_v57 }
 0xfef   :  { %v646_v62 = vpop.f32.mrf.mxu2 }
 0xff0   :  { %v650_v63 = vadd.f32 %v646_v62, %v94_v61 }
 0xff2   :  { %796 = vtanh.f32 %v650_v63 }
 0xff7   :  { %v648_v32 = vpop.f32.mrf.mxu2 }
 0xff8   :  { %v797_v7 = vpop.eup %796 }
 0xff9   :  { %656 = vrot.lane.b32.xlu2 %v797_v7, %s828_s17  ;;  %v652_v12 = vmul.f32 0.5, %v797_v7 }
 0xffb   :  { %v653_v29 = vadd.f32 0.5, %v652_v12 }
 0xffd   :  { %v654_v13 = vmul.f32 %v653_v29, %v585_v51  ;;  %v383_v51 = vsel %vm140_vm4, %v382_v48, 0.0 }
0x1001   :  { %594 = vrot.lane.b32.xlu2 %v591_v54, %s829_s18 }
0x102a   :  { %305 = vadd.xlane.f32.xlu2 %v304_v9 }
0x1053   :  { %v657_v2 = vpop.permute.xlu2 %656 }
0x1054   :  { %v659_v4 = vmul.f32 %v657_v2, %v653_v29 }
0x1056   :  { %661 = vrot.lane.b32.xlu0 %v659_v4, %s829_s18 }
0x105b   :  { %v595_v5 = vpop.permute.xlu2 %594 }
0x105c   :  { %738 = vmatmul.msk.f32.vlgmr.msra.gmra.mxu1 %vm114_vm3, %v595_v5 }
0x109d   :  { %v306_v35 = vpop.xlane.xlu2 %305 }
0x109e   :  { %v307_v30 = vadd.f32 %v767_v34, %v306_v35 }
0x10c8   :  { %v662_v6 = vpop.permute.xlu0 %661 }
0x10c9   :  { %v664_v15 = vadd.f32 %v662_v6, %v654_v13 }
0x10cb   :  { %798 = vtanh.f32 %v664_v15 }
0x10d1   :  { %v799_v16 = vpop.eup %798 }
0x10d2   :  { %667 = vrot.lane.b32.xlu1 %v799_v16, %s828_s17 }
0x10d9   :  { %v615_v17 = vpop.f32.mrf.mxu1 }
0x10da   :  { %v616_v18 = vadd.f32 %v1054_v0, %v615_v17 }
0x10dc   :  { %v618_v19 = vmax.f32 %v616_v18, 0.0 }
0x10de   :  { %v619_v20 = vmul.f32 %v1061_v11, %v618_v19 }
0x10e0   :  { %v620_v21 = vsel %vm140_vm4, %v619_v20, 0.0 }
0x10e1   :  { %621 = vadd.xlane.f32.xlu2 %v620_v21 }
0x10fc   :  { %142 = vadd.xlane.f32.xlu1 %v141_v28 }
0x1104   :  { %542 = vadd.xlane.f32.xlu1 %v541_v33 }
0x111d   :  { %310 = vperm.xlu1 %763, %v307_v30  }
0x1144   :  { %v668_v36 = vpop.permute.xlu1 %667 }
0x1145   :  { %v670_v38 = vmul.f32 %v668_v36, %v653_v29 }
0x1147   :  { %673 = vrot.lane.b32.xlu0 %v670_v38, %s829_s18 }
0x1154   :  { %v622_v57 = vpop.xlane.xlu2 %621 }
0x1155   :  { %v623_v59 = vadd.f32 %v767_v34, %v622_v57 }
0x116f   :  { %v143_v43 = vpop.xlane.xlu1 %142 }
0x1170   :  { %v145_v45 = vadd.f32 %v767_v34, %v143_v43 }
0x1171   :  { %226 = vadd.xlane.f32.xlu0 %v225_v46 }
0x1172   :  { %148 = vperm.xlu2 %764, %v145_v45  }
0x1177   :  { %v543_v49 = vpop.xlane.xlu1 %542 }
0x1178   :  { %v544_v50 = vadd.f32 %v767_v34, %v543_v49 }
0x1179   :  { %384 = vadd.xlane.f32.xlu0 %v383_v51 }
0x117a   :  { %547 = vperm.xlu1 %763, %v544_v50  }
0x1181   :  { %463 = vadd.xlane.f32.xlu0 %v462_v52 }
0x118f   :  { %v311_v29 = vpop.permute.xlu1 %310 }
0x11b9   :  { %v674_v53 = vpop.permute.xlu0 %673 }
0x11ba   :  { %740 = vmatmul.msk.f32.vlgmr.msra.gmra.mxu0 %vm114_vm3, %v674_v53 }
0x11cc   :  { %v149_v9 = vpop.permute.xlu2 %148 }
0x11cd   :  { %v151_v2 = vsel %vm109_vm5, %v149_v9, 0.0 }
0x11e4   :  { %v227_v54 = vpop.xlane.xlu0 %226 }
0x11e5   :  { %v228_v55 = vadd.f32 %v767_v34, %v227_v54 }
0x11e7   :  { %231 = vperm.xlu2 %764, %v228_v55  }
0x11ec   :  { %v385_v37 = vpop.xlane.xlu0 %384 }
0x11ed   :  { %v386_v56 = vadd.f32 %v767_v34, %v385_v37 }
0x11ef   :  { %389 = vperm.xlu2 %764, %v386_v56  }
0x11f4   :  { %v464_v58 = vpop.xlane.xlu0 %463 }
0x11f5   :  { %v465_v60 = vadd.f32 %v767_v34, %v464_v58 }
0x11f7   :  { %468 = vperm.xlu0 %762, %v465_v60   ;;  %626 = vperm.xlu2 %764, %v623_v59  }
0x1237   :  { %v694_v61 = vpop.f32.mrf.mxu0 }
0x1238   :  { %v695_v62 = vadd.f32 %v1054_v0, %v694_v61 }
0x123a   :  { %v697_v63 = vmax.f32 %v695_v62, 0.0 }
0x123c   :  { %v698_v32 = vmul.f32 %v1061_v11, %v697_v63  ;;  %v548_v11 = vpop.permute.xlu1 %547 }
0x123e   :  { %v699_v7 = vsel %vm140_vm4, %v698_v32, 0.0 }
0x123f   :  { %700 = vadd.xlane.f32.xlu0 %v699_v7 }
0x1241   :  { %v232_v12 = vpop.permute.xlu2 %231 }
0x1242   :  { %v234_v4 = vsel %vm197_vm6, %v232_v12, %v151_v2 }
0x1243   :  { %v313_v5 = vsel %vm276_vm7, %v311_v29, %v234_v4 }
0x1249   :  { %v390_v0 = vpop.permute.xlu2 %389 }
0x124a   :  { %v392_v13 = vsel %vm355_vm8, %v390_v0, %v313_v5 }
0x1251   :  { %v627_v16 = vpop.permute.xlu2 %626 }
0x1269   :  { %v469_v1 = vpop.permute.xlu0 %468 }
0x126a   :  { %v471_v6 = vsel %vm434_vm9, %v469_v1, %v392_v13 }
0x126b   :  { %v550_v15 = vsel %vm513_vm10, %v548_v11, %v471_v6 }
0x126c   :  { %v629_v18 = vsel %vm592_vm11, %v627_v16, %v550_v15 }
0x12b2   :  { %v701_v10 = vpop.xlane.xlu0 %700 }
0x12b3   :  { %v702_v8 = vadd.f32 %v767_v34, %v701_v10 }
0x12b5   :  { %705 = vperm.xlu1 %763, %v702_v8  }
0x1327   :  { %v706_v17 = vpop.permute.xlu1 %705 }
0x1328   :  { %v708_v19 = vsel %vm671_vm12, %v706_v17, %v629_v18 }
0x1329   :  { %709 = vst.msk [vmem:[#allocation2] sm:$0x3] %vm140_vm4, %v708_v19 }
0x132a   :  { %720 = dma.vmem_to_hbm [thread:$0]  %s716_s14, 32, %s718_s16, [#allocation3]  }
0x132b   :  { %824 = dma.done.wait [#allocation3], 32  }
0x132c   :  { %825 = vsyncadd [#allocation3], 4294967264 }
0x132d   :  { %725 = vsyncpa [#allocation3], 1 }

</bundles_post_ra>
